<compile_context>
chip_gen: v6e
topology: v6e:2x2x1
jax: 0.10.0
libtpu: 0.0.40
codegen_flags: <defaults>
</compile_context>

<pallas_src>
import functools

import jax
import jax.numpy as jnp
from jax.experimental import pallas as pl
from jax.experimental.pallas import tpu as pltpu

LANE = 128

# Static masks from the module __init__ (deterministic, no checkpoint).
_MSE_MASK = (1, 0, 0, 1, 1, 1, 0, 0)
_MAE_MASK = (0, 1, 0, 0, 0, 0, 1, 1)
_HUBER_MASK = (0, 0, 1, 0, 0, 0, 0, 0)
_MASK_LEN = 8

# Above this many 128-lane rows, use the pipelined/accumulating tiled path.
_MAX_SINGLE_ROWS = 512


def _weighted_loss(d, *, a_lt, b_lt, a_ge, b_ge, c_ge):
    """Fused  w_mse*d^2 + w_mae*|d| + w_hub*huber(d,1)  with weights folded
    into the two branches of a single select.  Works on traced arrays both
    in-kernel and in the tiny XLA tail epilogue."""
    ad = jnp.abs(d)
    sq = d * d

    def lin(a, b, c):
        terms = []
        if a != 0.0:
            terms.append(sq if a == 1.0 else a * sq)
        if b != 0.0:
            terms.append(ad if b == 1.0 else b * ad)
        expr = terms[0] if terms else jnp.zeros_like(ad)
        for t in terms[1:]:
            expr = expr + t
        if c != 0.0:
            expr = expr + c
        return expr

    lt = lin(a_lt, b_lt, 0.0)
    if (a_lt == a_ge) and (b_lt == b_ge) and (c_ge == 0.0):
        return lt  # huber weight is zero -> branches identical, no select
    ge = lin(a_ge, b_ge, c_ge)
    return jnp.where(ad < 1.0, lt, ge)


def _single_block_kernel(o_ref, t_ref, out_ref, *, weights, scale):
    """Whole problem in one VMEM block (grid-less call, single buffering).

    o_ref/t_ref: (rows, 128) native-dtype VMEM; out_ref: (1, 1) f32 SMEM.
    """
    d = o_ref[...].astype(jnp.float32) - t_ref[...].astype(jnp.float32)
    out_ref[0, 0] = jnp.sum(_weighted_loss(d, **weights)) * scale


def _tiled_accum_kernel(o_ref, t_ref, out_ref, *, weights, scale, tm,
                        valid_tail_rows):
    """Large-input path: per-block fused loss, accumulated into the resident
    (1,1) SMEM output across an 'arbitrary' grid.  The ragged last block is
    masked in-kernel (no HBM pad); OOB garbage (even NaN) is neutralized by
    the select."""
    step = pl.program_id(0)
    last = pl.num_programs(0) - 1

    @pl.when(step == 0)
    def _():
        out_ref[0, 0] = jnp.float32(0.0)

    d = o_ref[...].astype(jnp.float32) - t_ref[...].astype(jnp.float32)
    combined = _weighted_loss(d, **weights)
    if valid_tail_rows:  # static: rows % tm != 0 -> mask the last block's tail
        row = jax.lax.broadcasted_iota(jnp.int32, combined.shape, 0)
        limit = jnp.where(step == last, valid_tail_rows, tm)
        combined = jnp.where(row < limit, combined, 0.0)
    out_ref[0, 0] = out_ref[0, 0] + jnp.sum(combined)

    @pl.when(step == last)
    def _():
        out_ref[0, 0] = out_ref[0, 0] * scale


@functools.partial(jax.jit, static_argnames=("mse_importance", "mae_importance",
                                             "huber_importance"))
def loss_function_forward(output, target, mse_importance=1, mae_importance=1,
                          huber_importance=1):
    # Compile-time reduction weights: sum(mask) * importance, pre-folded with
    # the huber select.
    w_mse = float(sum(_MSE_MASK)) * float(mse_importance)
    w_mae = float(sum(_MAE_MASK)) * float(mae_importance)
    w_hub = float(sum(_HUBER_MASK)) * float(huber_importance)
    weights = dict(a_lt=w_mse + 0.5 * w_hub, b_lt=w_mae,
                   a_ge=w_mse, b_ge=w_mae + w_hub, c_ge=-0.5 * w_hub)

    o_flat = output.reshape(-1)   # native dtype; f32 cast happens in-kernel
    t_flat = target.reshape(-1)
    n = o_flat.size
    # mean over n elements, then torch.mean over the length-8 masked vector.
    scale = 1.0 / (float(n) * float(_MASK_LEN))

    rows = n // LANE
    n_main = rows * LANE
    tail = n - n_main

    main = jnp.float32(0.0)
    if rows > 0:
        if tail == 0:
            # Aligned (the common CHW case): pure reshape, no copy.
            o2 = o_flat.reshape(rows, LANE)
            t2 = t_flat.reshape(rows, LANE)
        else:
            # Non-128-aligned sizes: one slice copy of the aligned prefix;
            # the <128-element remainder is reduced in the tiny XLA epilogue.
            o2 = jax.lax.slice(o_flat, (0,), (n_main,)).reshape(rows, LANE)
            t2 = jax.lax.slice(t_flat, (0,), (n_main,)).reshape(rows, LANE)

        if rows <= _MAX_SINGLE_ROWS:
            # --- single-invocation path (used by the example) ---
            kernel = functools.partial(_single_block_kernel, weights=weights,
                                       scale=scale)
            out = pl.pallas_call(
                kernel,
                out_shape=jax.ShapeDtypeStruct((1, 1), jnp.float32),
                in_specs=[pl.BlockSpec(memory_space=pltpu.MemorySpace.VMEM),
                          pl.BlockSpec(memory_space=pltpu.MemorySpace.VMEM)],
                out_specs=pl.BlockSpec(memory_space=pltpu.MemorySpace.SMEM),
            )(o2, t2)
        else:
            # --- large-input path: pipelined row-block grid, SMEM accumulator ---
            bytes_per_row = LANE * (o2.dtype.itemsize + t2.dtype.itemsize)
            tm = (4 * 1024 * 1024) // bytes_per_row        # ~8 MiB double-buffered
            tm = max(1024, min(8192, (tm // 512) * 512))
            g = pl.cdiv(rows, tm)
            valid_tail_rows = rows - (g - 1) * tm
            if valid_tail_rows == tm:
                valid_tail_rows = 0                         # evenly divisible
            kernel = functools.partial(_tiled_accum_kernel, weights=weights,
                                       scale=scale, tm=tm,
                                       valid_tail_rows=valid_tail_rows)
            out = pl.pallas_call(
                kernel,
                out_shape=jax.ShapeDtypeStruct((1, 1), jnp.float32),
                grid=(g,),
                in_specs=[pl.BlockSpec((tm, LANE), lambda i: (i, 0)),
                          pl.BlockSpec((tm, LANE), lambda i: (i, 0))],
                out_specs=pl.BlockSpec(memory_space=pltpu.MemorySpace.SMEM),
                compiler_params=pltpu.CompilerParams(
                    dimension_semantics=("arbitrary",)),
            )(o2, t2)
        main = out[0, 0]

    if tail:
        # <128 leftover elements: trivial XLA epilogue (static branch, no ops
        # emitted for aligned inputs).
        d = (o_flat[n_main:].astype(jnp.float32)
             - t_flat[n_main:].astype(jnp.float32))
        main = main + jnp.sum(_weighted_loss(d, **weights)) * scale
    return main


def _reference(output, target, mse_importance=1, mae_importance=1,
               huber_importance=1):
    o = output.astype(jnp.float32)
    t = target.astype(jnp.float32)
    d = o - t
    ad = jnp.abs(d)
    mse = jnp.mean(d * d)
    mae = jnp.mean(ad)
    hub = jnp.mean(jnp.where(ad < 1.0, 0.5 * d * d, ad - 0.5))
    mse_mask = jnp.array(_MSE_MASK, jnp.float32) * mse_importance
    mae_mask = jnp.array(_MAE_MASK, jnp.float32) * mae_importance
    hub_mask = jnp.array(_HUBER_MASK, jnp.float32) * huber_importance
    return jnp.mean(mse * mse_mask + mae * mae_mask + hub * hub_mask)


if __name__ == "__main__":
    key = jax.random.PRNGKey(0)
    k1, k2, k3, k4 = jax.random.split(key, 4)

    # Small NCHW prediction/target pair consistent with the module's usage
    # (exercises the single-block path).
    output = jax.random.normal(k1, (2, 4, 16, 16), dtype=jnp.float32)
    target = jax.random.normal(k2, (2, 4, 16, 16), dtype=jnp.float32)
    result = loss_function_forward(output, target)
    jax.block_until_ready(result)
    ref = _reference(output, target)
    assert jnp.allclose(result, ref, rtol=1e-5, atol=1e-5), (result, ref)

    # Moderately larger case to exercise the pipelined/accumulating path
    # (1024 rows > _MAX_SINGLE_ROWS, ragged vs. TM -> in-kernel tail mask).
    output2 = jax.random.normal(k3, (2, 4, 128, 128), dtype=jnp.float32)
    target2 = jax.random.normal(k4, (2, 4, 128, 128), dtype=jnp.float32)
    result2 = loss_function_forward(output2, target2)
    jax.block_until_ready(result2)
    ref2 = _reference(output2, target2)
    assert jnp.allclose(result2, ref2, rtol=1e-5, atol=1e-5), (result2, ref2)

    print("KERNEL_OK")
</pallas_src>

<mosaic_0001>
module attributes {stable_mosaic.version = 11 : i64} {
  func.func @_single_block_kernel(%arg0: memref<16x128xf32, #tpu.memory_space<vmem>>, %arg1: memref<16x128xf32, #tpu.memory_space<vmem>>, %arg2: memref<1x1xf32, #tpu.memory_space<smem>>) attributes {dimension_semantics = [], scalar_prefetch = 0 : i64, scratch_operands = 0 : i64, tpu.core_type = #tpu.core_type<tc>} {
    %c0 = arith.constant 0 : index
    %c0_0 = arith.constant 0 : index
    %0 = vector.load %arg0[%c0, %c0_0] : memref<16x128xf32, #tpu.memory_space<vmem>>, vector<16x128xf32>
    %c0_1 = arith.constant 0 : index
    %c0_2 = arith.constant 0 : index
    %1 = vector.load %arg1[%c0_1, %c0_2] : memref<16x128xf32, #tpu.memory_space<vmem>>, vector<16x128xf32>
    %2 = arith.subf %0, %1 : vector<16x128xf32>
    %3 = math.absf %2 : vector<16x128xf32>
    %4 = arith.mulf %2, %2 : vector<16x128xf32>
    %cst = arith.constant 4.500000e+00 : f32
    %5 = vector.broadcast %cst : f32 to vector<16x128xf32>
    %6 = arith.mulf %5, %4 : vector<16x128xf32>
    %cst_3 = arith.constant 3.000000e+00 : f32
    %7 = vector.broadcast %cst_3 : f32 to vector<16x128xf32>
    %8 = arith.mulf %7, %3 : vector<16x128xf32>
    %9 = arith.addf %6, %8 : vector<16x128xf32>
    %cst_4 = arith.constant 4.000000e+00 : f32
    %10 = vector.broadcast %cst_4 : f32 to vector<16x128xf32>
    %11 = arith.mulf %10, %4 : vector<16x128xf32>
    %cst_5 = arith.constant 4.000000e+00 : f32
    %12 = vector.broadcast %cst_5 : f32 to vector<16x128xf32>
    %13 = arith.mulf %12, %3 : vector<16x128xf32>
    %14 = arith.addf %11, %13 : vector<16x128xf32>
    %cst_6 = arith.constant -5.000000e-01 : f32
    %15 = vector.broadcast %cst_6 : f32 to vector<16x128xf32>
    %16 = arith.addf %14, %15 : vector<16x128xf32>
    %cst_7 = arith.constant 1.000000e+00 : f32
    %17 = vector.broadcast %cst_7 : f32 to vector<16x128xf32>
    %18 = arith.cmpf olt, %3, %17 : vector<16x128xf32>
    %19 = arith.select %18, %9, %16 : vector<16x128xi1>, vector<16x128xf32>
    %20 = vector.shape_cast %19 : vector<16x128xf32> to vector<1x16x128xf32>
    %cst_8 = arith.constant dense<0.000000e+00> : vector<1xf32>
    %21 = vector.multi_reduction <add>, %20, %cst_8 [1, 2] : vector<1x16x128xf32> to vector<1xf32>
    %22 = vector.shape_cast %21 : vector<1xf32> to vector<1x1x1xf32>
    %23 = vector.extract %22[0, 0, 0] : f32 from vector<1x1x1xf32>
    %cst_9 = arith.constant 6.10351563E-5 : f32
    %24 = arith.mulf %23, %cst_9 : f32
    %c0_10 = arith.constant 0 : index
    %c0_11 = arith.constant 0 : index
    %25 = memref.load %arg2[%c0_10, %c0_11] : memref<1x1xf32, #tpu.memory_space<smem>>
    memref.store %24, %arg2[%c0_10, %c0_11] : memref<1x1xf32, #tpu.memory_space<smem>>
    return
  }
}

</mosaic_0001>

<bundles_post_ra>
// kernel: loss_function_forward.1
= control target key start
LH: loop header
LB: loop body
LE: loop exit
PB: predicated region body
PF: predicated region fallthrough
CT: control target
= control target key end

     0   :  { %s110_s0 = inlined_call_operand.vmem [shape: f32[16,128], index: 0, kind: input, shape index: {}]   ;;  %s111_s1 = inlined_call_operand.vmem [shape: f32[16,128], index: 1, kind: input, shape index: {}]   ;;  %s112_s2 = inlined_call_operand.hbm [shape: f32[1,1], index: 2, kind: output, shape index: {}]  }
   0x1   :  { %v12_v0 = vld [vmem:[%s110_s0] sm:$0xff]  ;;  %v13_v1 = vld [vmem:[%s110_s0 + $0x8] sm:$0xff] }
   0x2   :  { %v14_v2 = vld [vmem:[%s111_s1] sm:$0xff]  ;;  %v15_v3 = vld [vmem:[%s111_s1 + $0x8] sm:$0xff] }
   0x3   :  { %v16_v4 = vsub.f32 %v12_v0, %v14_v2 }
   0x4   :  { %7 = vsyncpa [#allocation3], 0  ;;  %v17_v5 = vsub.f32 %v13_v1, %v15_v3  ;;  %s79_s17 = smov [#allocation2]  }
   0x5   :  { %v18_v6 = vand.u32 2147483647, %v16_v4  ;;  %v20_v7 = vmul.f32 %v16_v4, %v16_v4 }
   0x6   :  { %v19_v8 = vand.u32 2147483647, %v17_v5  ;;  %v21_v9 = vmul.f32 %v17_v5, %v17_v5 }
   0x7   :  { %v22_v10 = vmul.f32 4.5, %v20_v7  ;;  %v24_v11 = vmul.f32 3.0, %v18_v6  ;;  %v28_v12 = vmul.f32 4.0, %v20_v7  ;;  %v30_v13 = vmul.f32 4.0, %v18_v6 }
   0x8   :  { %v23_v14 = vmul.f32 4.5, %v21_v9  ;;  %v25_v15 = vmul.f32 3.0, %v19_v8  ;;  %v29_v16 = vmul.f32 4.0, %v21_v9  ;;  %v31_v17 = vmul.f32 4.0, %v19_v8 }
   0x9   :  { %v26_v18 = vadd.f32 %v24_v11, %v22_v10  ;;  %v32_v19 = vadd.f32 %v30_v13, %v28_v12  ;;  %vm36_vm0 = vcmp.lt.f32.partialorder %v18_v6, 1.0  ;;  %vm37_vm1 = vcmp.lt.f32.partialorder %v19_v8, 1.0 }
   0xa   :  { %v27_v20 = vadd.f32 %v25_v15, %v23_v14  ;;  %v33_v21 = vadd.f32 %v31_v17, %v29_v16 }
   0xb   :  { %v34_v22 = vadd.f32 -0.5, %v32_v19 }
   0xc   :  { %v35_v23 = vadd.f32 -0.5, %v33_v21 }
   0xd   :  { %v38_v24 = vsel %vm36_vm0, %v26_v18, %v34_v22 }
   0xe   :  { %v39_v25 = vsel %vm37_vm1, %v27_v20, %v35_v23 }
   0xf   :  { %v40_v26 = vadd.f32 %v39_v25, %v38_v24 }
  0x11   :  { %41 = vadd.xlane.f32.xlu0 %v40_v26 }
  0x9a   :  { %v42_v27 = vpop.xlane.xlu0 %41 }
  0x9b   :  { %v43_v28 = vrot.slane %v42_v27, 4 }
  0x9d   :  { %v44_v29 = vadd.f32 %v43_v28, %v42_v27 }
  0x9f   :  { %v45_v30 = vrot.slane %v44_v29, 2 }
  0xa1   :  { %v46_v31 = vadd.f32 %v45_v30, %v44_v29 }
  0xa3   :  { %v47_v32 = vrot.slane %v46_v31, 1 }
  0xa5   :  { %v48_v33 = vadd.f32 %v47_v32, %v46_v31 }
  0xa7   :  { %66 = vpush %v48_v33 }
  0xd8   :  { %s67_s0 = spop %66 }
  0xd9   :  { %s50_s1 = smul.f32 6.1035156e-05, %s67_s0 }
  0xdb   :  { %52 = sst [smem:[#allocation2]] %s50_s1 }
  0xdc   :  { %60 = dma.smem_to_hbm %s79_s17, 16, %s112_s2, [#allocation3]  }
  0xdd   :  { %77 = dma.done.wait [#allocation3], 16  }
  0xde   :  { %78 = vsyncadd [#allocation3], 4294967280 }
  0xdf   :  { %64 = sfence }
  0xe0   :  { %65 = vsyncpa [#allocation3], 1 }

</bundles_post_ra>
